<compile_context>
chip_gen: v7x
topology: tpu7x:2x2x1
jax: 0.10.0
libtpu: 0.0.40
codegen_flags: <defaults>
</compile_context>

<pallas_src>
import functools

import jax
import jax.numpy as jnp
from jax.experimental import pallas as pl
from jax.experimental.pallas import tpu as pltpu


def _round_up(x: int, m: int) -> int:
    return ((x + m - 1) // m) * m


# -----------------------------------------------------------------------------
# Phase 1: build the (P_pad, H_pad) table  T = tanh(E @ W1 + b1) @ W2 + b2.
# Single block, runs once regardless of batch size.
# -----------------------------------------------------------------------------
def _prefix_table_kernel(emb_ref, w1_ref, b1_ref, w2_ref, b2_ref, t_ref):
    h = jnp.tanh(
        jnp.dot(emb_ref[...], w1_ref[...], preferred_element_type=jnp.float32)
        + b1_ref[...])
    t_ref[...] = (
        jnp.dot(h, w2_ref[...], preferred_element_type=jnp.float32)
        + b2_ref[...]).astype(t_ref.dtype)


# -----------------------------------------------------------------------------
# Phase 2: per-token row gather of the table via an exact one-hot MXU matmul.
#   idx_ref: (TILE_N, 1) int32   t_ref: (P_pad, H_pad) f32 (VMEM resident)
#   out_ref: (TILE_N, H_pad) f32 (lane-dense stores)
# -----------------------------------------------------------------------------
def _prefix_gather_kernel(idx_ref, t_ref, out_ref):
    idx = idx_ref[...]                                        # (TILE_N, 1)
    tile_n = idx.shape[0]
    p_pad = t_ref.shape[0]
    col = jax.lax.broadcasted_iota(jnp.int32, (tile_n, p_pad), 1)
    onehot = (col == idx).astype(jnp.float32)                 # (TILE_N, P_pad)
    out_ref[...] = jnp.dot(
        onehot, t_ref[...], preferred_element_type=jnp.float32
    ).astype(out_ref.dtype)


@functools.partial(jax.jit, static_argnames=("tile_n",))
def prefix_encoder(prefix, embedding, w1, b1, w2, b2, *, tile_n=256):
    """prefix: (B, L) int; weights stored as (in, out). Returns (B, L, H) f32."""
    B, L = prefix.shape
    P, H = embedding.shape
    N = B * L

    h_pad = _round_up(H, 128)              # lane-dense output stores
    p_pad = _round_up(P, 8)                # sublane-aligned table
    tile_n = min(tile_n, _round_up(N, 8))  # don't over-pad tiny batches
    n_tiles = pl.cdiv(N, tile_n)
    n_pad = n_tiles * tile_n

    f32 = jnp.float32
    # Zero-padding keeps the padded output columns exactly zero.
    emb_p = jnp.pad(embedding.astype(f32), ((0, p_pad - P), (0, h_pad - H)))
    w1_p = jnp.pad(w1.astype(f32), ((0, h_pad - H), (0, h_pad - H)))
    w2_p = jnp.pad(w2.astype(f32), ((0, h_pad - H), (0, h_pad - H)))
    b1_p = jnp.pad(b1.astype(f32), (0, h_pad - H)).reshape(1, h_pad)
    b2_p = jnp.pad(b2.astype(f32), (0, h_pad - H)).reshape(1, h_pad)

    vmem = pl.BlockSpec(memory_space=pltpu.VMEM)
    table = pl.pallas_call(
        _prefix_table_kernel,
        out_shape=jax.ShapeDtypeStruct((p_pad, h_pad), f32),
        in_specs=[vmem] * 5,
        out_specs=vmem,
        compiler_params=pltpu.CompilerParams(
            vmem_limit_bytes=32 * 1024 * 1024),
        cost_estimate=pl.CostEstimate(
            flops=4 * p_pad * h_pad * h_pad,
            transcendentals=p_pad * h_pad,
            bytes_accessed=4 * (2 * p_pad * h_pad + 2 * h_pad * h_pad + 2 * h_pad)),
    )(emb_p, w1_p, b1_p, w2_p, b2_p)

    idx = jnp.pad(prefix.reshape(N).astype(jnp.int32), (0, n_pad - N))
    idx = idx.reshape(n_pad, 1)

    out = pl.pallas_call(
        _prefix_gather_kernel,
        out_shape=jax.ShapeDtypeStruct((n_pad, h_pad), f32),
        grid=(n_tiles,),
        in_specs=[
            pl.BlockSpec((tile_n, 1), lambda i: (i, 0)),      # token ids, tiled
            pl.BlockSpec((p_pad, h_pad), lambda i: (0, 0)),   # table, resident
        ],
        out_specs=pl.BlockSpec((tile_n, h_pad), lambda i: (i, 0)),
        compiler_params=pltpu.CompilerParams(
            dimension_semantics=("parallel",),   # v7x megacore row sharding
            vmem_limit_bytes=32 * 1024 * 1024),
        cost_estimate=pl.CostEstimate(
            flops=2 * n_pad * p_pad * h_pad,
            transcendentals=0,
            bytes_accessed=4 * (n_pad + p_pad * h_pad + n_pad * h_pad)),
    )(idx, table)

    return out[:N, :H].reshape(B, L, H)


def _reference(prefix, embedding, w1, b1, w2, b2):
    x = jnp.take(embedding, prefix, axis=0)              # (B, L, H)
    h = jnp.tanh(x @ w1 + b1)
    return h @ w2 + b2


if __name__ == "__main__":
    # cfg.prefix.pre_seq_len = 16, cfg.gt.dim_hidden = 32, batch = 2, L = 8
    B, L = 2, 8
    P, H = 16, 32

    key = jax.random.PRNGKey(0)
    k_idx, k_emb, k_w1, k_b1, k_w2, k_b2 = jax.random.split(key, 6)

    prefix = jax.random.randint(k_idx, (B, L), 0, P, dtype=jnp.int32)
    embedding = jax.random.normal(k_emb, (P, H), dtype=jnp.float32) * 0.1
    # Linear weights stored as (in, out); equivalent to torch's (out, in)^T.
    w1 = jax.random.normal(k_w1, (H, H), dtype=jnp.float32) * 0.1
    b1 = jax.random.normal(k_b1, (H,), dtype=jnp.float32) * 0.1
    w2 = jax.random.normal(k_w2, (H, H), dtype=jnp.float32) * 0.1
    b2 = jax.random.normal(k_b2, (H,), dtype=jnp.float32) * 0.1

    out = prefix_encoder(prefix, embedding, w1, b1, w2, b2)
    out = jax.block_until_ready(out)

    ref = _reference(prefix, embedding, w1, b1, w2, b2)
    assert out.shape == (B, L, H), out.shape
    assert jnp.allclose(out, ref, atol=1e-5, rtol=1e-5), "mismatch vs reference"

    print("KERNEL_OK")
</pallas_src>

<mosaic_0001>
module attributes {stable_mosaic.version = 11 : i64} {
  func.func @_prefix_gather_kernel(%arg0: i32, %arg1: memref<16x1xi32, #tpu.memory_space<vmem>>, %arg2: memref<16x128xf32, #tpu.memory_space<vmem>>, %arg3: memref<16x128xf32, #tpu.memory_space<vmem>>) attributes {dimension_semantics = [#tpu.dimension_semantics<parallel>], iteration_bounds = array<i64: 1>, scalar_prefetch = 0 : i64, scratch_operands = 0 : i64, tpu.core_type = #tpu.core_type<tc>, window_params = [{transform_indices = @transform_0, window_bounds = array<i64: 16, 1>}, {pipeline_mode = #tpu.pipeline_mode<synchronous>, transform_indices = @transform_1, window_bounds = array<i64: 16, 128>}, {transform_indices = @transform_2, window_bounds = array<i64: 16, 128>}]} {
    %c0 = arith.constant 0 : index
    %c0_0 = arith.constant 0 : index
    %0 = vector.load %arg1[%c0, %c0_0] : memref<16x1xi32, #tpu.memory_space<vmem>>, vector<16x1xi32>
    %1 = tpu.iota {dimensions = array<i32: 1>} : vector<16x16xi32>
    %2 = vector.broadcast %0 : vector<16x1xi32> to vector<16x16xi32>
    %3 = arith.cmpi eq, %1, %2 : vector<16x16xi32>
    %4 = arith.extui %3 : vector<16x16xi1> to vector<16x16xi32>
    %5 = arith.sitofp %4 : vector<16x16xi32> to vector<16x16xf32>
    %c0_1 = arith.constant 0 : index
    %c0_2 = arith.constant 0 : index
    %6 = vector.load %arg2[%c0_1, %c0_2] : memref<16x128xf32, #tpu.memory_space<vmem>>, vector<16x128xf32>
    %cst = arith.constant dense<0.000000e+00> : vector<16x128xf32>
    %7 = tpu.matmul %5, %6, %cst {dimension_numbers = #tpu.dot_dimension_numbers<[1], [0], [0], [1], [0, 0, 1, 1], [], []>} : vector<16x16xf32>, vector<16x128xf32>, vector<16x128xf32> -> vector<16x128xf32>
    %c0_3 = arith.constant 0 : index
    %c0_4 = arith.constant 0 : index
    %8 = vector.load %arg3[%c0_3, %c0_4] : memref<16x128xf32, #tpu.memory_space<vmem>>, vector<16x128xf32>
    tpu.vector_store %arg3[%c0_3, %c0_4], %7 {strides = array<i32>} : memref<16x128xf32, #tpu.memory_space<vmem>>, vector<16x128xf32>,
    return
  }
  func.func @transform_0(%arg0: i32) -> (i32, i32) {
    %c0_i32 = arith.constant 0 : i32
    %c0_i32_0 = arith.constant 0 : i32
    return %arg0, %c0_i32 : i32, i32
  }
  func.func @transform_1(%arg0: i32) -> (i32, i32) {
    %c0_i32 = arith.constant 0 : i32
    %c0_i32_0 = arith.constant 0 : i32
    %c0_i32_1 = arith.constant 0 : i32
    return %c0_i32, %c0_i32_0 : i32, i32
  }
  func.func @transform_2(%arg0: i32) -> (i32, i32) {
    %c0_i32 = arith.constant 0 : i32
    %c0_i32_0 = arith.constant 0 : i32
    return %arg0, %c0_i32 : i32, i32
  }
}

module attributes {stable_mosaic.version = 11 : i64} {
  func.func @_prefix_table_kernel(%arg0: memref<16x128xf32, #tpu.memory_space<vmem>>, %arg1: memref<128x128xf32, #tpu.memory_space<vmem>>, %arg2: memref<1x128xf32, #tpu.memory_space<vmem>>, %arg3: memref<128x128xf32, #tpu.memory_space<vmem>>, %arg4: memref<1x128xf32, #tpu.memory_space<vmem>>, %arg5: memref<16x128xf32, #tpu.memory_space<vmem>>) attributes {dimension_semantics = [], scalar_prefetch = 0 : i64, scratch_operands = 0 : i64, tpu.core_type = #tpu.core_type<tc>} {
    %c0 = arith.constant 0 : index
    %c0_0 = arith.constant 0 : index
    %0 = vector.load %arg0[%c0, %c0_0] : memref<16x128xf32, #tpu.memory_space<vmem>>, vector<16x128xf32>
    %c0_1 = arith.constant 0 : index
    %c0_2 = arith.constant 0 : index
    %1 = vector.load %arg1[%c0_1, %c0_2] : memref<128x128xf32, #tpu.memory_space<vmem>>, vector<128x128xf32>
    %cst = arith.constant dense<0.000000e+00> : vector<16x128xf32>
    %2 = tpu.matmul %0, %1, %cst {dimension_numbers = #tpu.dot_dimension_numbers<[1], [0], [0], [1], [0, 0, 1, 1], [], []>} : vector<16x128xf32>, vector<128x128xf32>, vector<16x128xf32> -> vector<16x128xf32>
    %c0_3 = arith.constant 0 : index
    %c0_4 = arith.constant 0 : index
    %3 = vector.load %arg2[%c0_3, %c0_4] : memref<1x128xf32, #tpu.memory_space<vmem>>, vector<1x128xf32>
    %4 = vector.broadcast %3 : vector<1x128xf32> to vector<16x128xf32>
    %5 = arith.addf %2, %4 : vector<16x128xf32>
    %6 = math.tanh %5 : vector<16x128xf32>
    %c0_5 = arith.constant 0 : index
    %c0_6 = arith.constant 0 : index
    %7 = vector.load %arg3[%c0_5, %c0_6] : memref<128x128xf32, #tpu.memory_space<vmem>>, vector<128x128xf32>
    %cst_7 = arith.constant dense<0.000000e+00> : vector<16x128xf32>
    %8 = tpu.matmul %6, %7, %cst_7 {dimension_numbers = #tpu.dot_dimension_numbers<[1], [0], [0], [1], [0, 0, 1, 1], [], []>} : vector<16x128xf32>, vector<128x128xf32>, vector<16x128xf32> -> vector<16x128xf32>
    %c0_8 = arith.constant 0 : index
    %c0_9 = arith.constant 0 : index
    %9 = vector.load %arg4[%c0_8, %c0_9] : memref<1x128xf32, #tpu.memory_space<vmem>>, vector<1x128xf32>
    %10 = vector.broadcast %9 : vector<1x128xf32> to vector<16x128xf32>
    %11 = arith.addf %8, %10 : vector<16x128xf32>
    %c0_10 = arith.constant 0 : index
    %c0_11 = arith.constant 0 : index
    %12 = vector.load %arg5[%c0_10, %c0_11] : memref<16x128xf32, #tpu.memory_space<vmem>>, vector<16x128xf32>
    tpu.vector_store %arg5[%c0_10, %c0_11], %11 {strides = array<i32>} : memref<16x128xf32, #tpu.memory_space<vmem>>, vector<16x128xf32>,
    return
  }
}

</mosaic_0001>

<bundles_post_ra>
// kernel: prefix_encoder.2
= control target key start
LH: loop header
LB: loop body
LE: loop exit
PB: predicated region body
PF: predicated region fallthrough
CT: control target
= control target key end

     0   :  { %s546_s1 = inlined_call_operand.vmem [shape: f32[128,128], index: 1, kind: input, shape index: {}]   ;;  %s547_s0 = inlined_call_operand.vmem [shape: f32[16,128], index: 0, kind: input, shape index: {}]   ;;  %s548_s3 = inlined_call_operand.vmem [shape: f32[128,128], index: 3, kind: input, shape index: {}]   ;;  %s549_s2 = inlined_call_operand.vmem [shape: f32[1,128], index: 2, kind: input, shape index: {}]   ;;  %s550_s4 = inlined_call_operand.vmem [shape: f32[1,128], index: 4, kind: input, shape index: {}]   ;;  %s551_s5 = inlined_call_operand.vmem [shape: f32[16,128], index: 5, kind: output, shape index: {}]  }
   0x1   :  { %v22_v0 = vld [vmem:[%s546_s1] sm:$0xff]  ;;  %v23_v1 = vld [vmem:[%s546_s1 + $0x8] sm:$0xff]  ;;  %v24_v2 = vld [vmem:[%s546_s1 + $0x10] sm:$0xff] }
   0x2   :  { %v334_v3 = vpack.c.bf16 %v23_v1, %v22_v0  ;;  %v25_v4 = vld [vmem:[%s546_s1 + $0x18] sm:$0xff]  ;;  %v26_v6 = vld [vmem:[%s546_s1 + $0x20] sm:$0xff]  ;;  %v27_v7 = vld [vmem:[%s546_s1 + $0x28] sm:$0xff] }
   0x3   :  { %v338_v5 = vpack.c.bf16 %v25_v4, %v24_v2  ;;  %v342_v8 = vpack.c.bf16 %v27_v7, %v26_v6  ;;  %v28_v9 = vld [vmem:[%s546_s1 + $0x30] sm:$0xff]  ;;  %v29_v10 = vld [vmem:[%s546_s1 + $0x38] sm:$0xff]  ;;  %v20_v11 = vld [vmem:[%s547_s0] sm:$0xff] }
   0x4   :  { %335 = vmatprep.subr.bf16.mxu0 %v334_v3  ;;  %296 = vmatprep.mubr.f32.mxu0 %v20_v11  ;;  %v122_v12 = vld [vmem:[%s548_s3] sm:$0xff]  ;;  %v123_v13 = vld [vmem:[%s548_s3 + $0x8] sm:$0xff]  ;;  %v124_v14 = vld [vmem:[%s548_s3 + $0x10] sm:$0xff]  ;;  %v346_v20 = vpack.c.bf16 %v29_v10, %v28_v9 }
   0x5   :  { %337 = vmatpush3.bf16.msra.mxu0 %v334_v3  ;;  %v366_v15 = vpack.c.bf16 %v123_v13, %v122_v12  ;;  %v125_v16 = vld [vmem:[%s548_s3 + $0x18] sm:$0xff]  ;;  %v126_v18 = vld [vmem:[%s548_s3 + $0x20] sm:$0xff]  ;;  %v127_v19 = vld [vmem:[%s548_s3 + $0x28] sm:$0xff] }
   0x6   :  { %339 = vmatprep.subr.bf16.mxu0 %v338_v5  ;;  %v370_v17 = vpack.c.bf16 %v125_v16, %v124_v14  ;;  %v30_v21 = vld [vmem:[%s546_s1 + $0x40] sm:$0xff]  ;;  %v31_v22 = vld [vmem:[%s546_s1 + $0x48] sm:$0xff]  ;;  %v374_v23 = vpack.c.bf16 %v127_v19, %v126_v18  ;;  %v128_v24 = vld [vmem:[%s548_s3 + $0x30] sm:$0xff] }
   0x7   :  { %367 = vmatprep.subr.bf16.mxu1 %v366_v15  ;;  %v129_v25 = vld [vmem:[%s548_s3 + $0x38] sm:$0xff]  ;;  %v350_v26 = vpack.c.bf16 %v31_v22, %v30_v21  ;;  %v32_v27 = vld [vmem:[%s546_s1 + $0x50] sm:$0xff]  ;;  %v34_v31 = vld [vmem:[%s546_s1 + $0x60] sm:$0xff] }
   0x8   :  { %369 = vmatpush3.bf16.msra.mxu1 %v366_v15  ;;  %v33_v28 = vld [vmem:[%s546_s1 + $0x58] sm:$0xff]  ;;  %v378_v29 = vpack.c.bf16 %v129_v25, %v128_v24  ;;  %v35_v32 = vld [vmem:[%s546_s1 + $0x68] sm:$0xff]  ;;  %v36_v34 = vld [vmem:[%s546_s1 + $0x70] sm:$0xff] }
   0x9   :  { %341 = vmatpush3.bf16.msra.mxu0 %v338_v5  ;;  %371 = vmatprep.subr.bf16.mxu1 %v370_v17  ;;  %v354_v30 = vpack.c.bf16 %v33_v28, %v32_v27  ;;  %v358_v33 = vpack.c.bf16 %v35_v32, %v34_v31  ;;  %v37_v35 = vld [vmem:[%s546_s1 + $0x78] sm:$0xff]  ;;  %v21_v37 = vld [vmem:[%s547_s0 + $0x8] sm:$0xff]  ;;  %v130_v38 = vld [vmem:[%s548_s3 + $0x40] sm:$0xff] }
   0xa   :  { %343 = vmatprep.subr.bf16.mxu0 %v342_v8  ;;  %v362_v36 = vpack.c.bf16 %v37_v35, %v36_v34  ;;  %v131_v39 = vld [vmem:[%s548_s3 + $0x48] sm:$0xff]  ;;  %v132_v41 = vld [vmem:[%s548_s3 + $0x50] sm:$0xff]  ;;  %v133_v42 = vld [vmem:[%s548_s3 + $0x58] sm:$0xff] }
   0xb   :  { %v382_v40 = vpack.c.bf16 %v131_v39, %v130_v38  ;;  %v386_v43 = vpack.c.bf16 %v133_v42, %v132_v41  ;;  %v134_v44 = vld [vmem:[%s548_s3 + $0x60] sm:$0xff]  ;;  %v135_v45 = vld [vmem:[%s548_s3 + $0x68] sm:$0xff]  ;;  %v136_v46 = vld [vmem:[%s548_s3 + $0x70] sm:$0xff] }
   0xc   :  { %373 = vmatpush3.bf16.msra.mxu1 %v370_v17  ;;  %v390_v47 = vpack.c.bf16 %v135_v45, %v134_v44  ;;  %v137_v48 = vld [vmem:[%s548_s3 + $0x78] sm:$0xff]  ;;  %v226_v50 = vld [vmem:[%s549_s2] ss:$0 sm:$0xff] }
   0xd   :  { %345 = vmatpush3.bf16.msra.mxu0 %v342_v8  ;;  %375 = vmatprep.subr.bf16.mxu1 %v374_v23  ;;  %v394_v49 = vpack.c.bf16 %v137_v48, %v136_v46  ;;  %v227_v57 = vld [vmem:[%s550_s4] ss:$0 sm:$0xff] }
   0xe   :  { %347 = vmatprep.subr.bf16.mxu0 %v346_v20 }
  0x10   :  { %377 = vmatpush3.bf16.msra.mxu1 %v374_v23 }
  0x11   :  { %349 = vmatpush3.bf16.msra.mxu0 %v346_v20  ;;  %379 = vmatprep.subr.bf16.mxu1 %v378_v29 }
  0x12   :  { %351 = vmatprep.subr.bf16.mxu0 %v350_v26 }
  0x14   :  { %381 = vmatpush3.bf16.msra.mxu1 %v378_v29 }
  0x15   :  { %353 = vmatpush3.bf16.msra.mxu0 %v350_v26  ;;  %383 = vmatprep.subr.bf16.mxu1 %v382_v40 }
  0x16   :  { %355 = vmatprep.subr.bf16.mxu0 %v354_v30 }
  0x18   :  { %385 = vmatpush3.bf16.msra.mxu1 %v382_v40 }
  0x19   :  { %357 = vmatpush3.bf16.msra.mxu0 %v354_v30  ;;  %387 = vmatprep.subr.bf16.mxu1 %v386_v43 }
  0x1a   :  { %359 = vmatprep.subr.bf16.mxu0 %v358_v33 }
  0x1c   :  { %389 = vmatpush3.bf16.msra.mxu1 %v386_v43 }
  0x1d   :  { %361 = vmatpush3.bf16.msra.mxu0 %v358_v33  ;;  %391 = vmatprep.subr.bf16.mxu1 %v390_v47 }
  0x1e   :  { %363 = vmatprep.subr.bf16.mxu0 %v362_v36 }
  0x20   :  { %393 = vmatpush3.bf16.msra.mxu1 %v390_v47 }
  0x21   :  { %365 = vmatpush3.bf16.msra.mxu0 %v362_v36  ;;  %395 = vmatprep.subr.bf16.mxu1 %v394_v49 }
  0x24   :  { %297 = vmatmul.mubr.f32.vlgmr.msra.gmra.mrb[0].mxu0 %v21_v37  ;;  %397 = vmatpush3.bf16.msra.mxu1 %v394_v49 }
  0xf7   :  { %v298_v51 = vpop.f32.mrb[0].mxu0 }
  0xf8   :  { %v117_v52 = vadd.f32 %v298_v51, %v226_v50  ;;  %v111_v53 = vpop.f32.mrb[1].mxu0 }
  0xf9   :  { %v112_v54 = vadd.f32 %v226_v50, %v111_v53 }
  0xfb   :  { %398 = vtanh.f32 %v112_v54 }
  0xfc   :  { %400 = vtanh.f32 %v117_v52 }
 0x105   :  { %v399_v55 = vpop.eup %398 }
 0x106   :  { %v401_v56 = vpop.eup %400  ;;  %331 = vmatprep.mubr.f32.mxu1 %v399_v55 }
 0x107   :  { %332 = vmatmul.mubr.f32.vlgmr.msra.gmra.mrb[0].mxu1 %v401_v56 }
 0x1da   :  { %v333_v58 = vpop.f32.mrb[0].mxu1 }
 0x1db   :  { %v217_v59 = vadd.f32 %v333_v58, %v227_v57  ;;  %v211_v60 = vpop.f32.mrb[1].mxu1 }
 0x1dc   :  { %v212_v61 = vadd.f32 %v227_v57, %v211_v60 }
 0x1dd   :  { %221 = vst [vmem:[%s551_s5 + $0x8] sm:$0xff] %v217_v59 }
 0x1de   :  { %220 = vst [vmem:[%s551_s5] sm:$0xff] %v212_v61 }

// kernel: prefix_encoder.3
= control target key start
LH: loop header
LB: loop body
LE: loop exit
PB: predicated region body
PF: predicated region fallthrough
CT: control target
= control target key end

     0   :  { %v139_v0 = vmov 0   ;;  %v13_v6 = vlaneseq  ;;  %vm29_vm0 = vcmask 130048   ;;  %v140_v9 = vmov 0.0   ;;  %s174_s0 = inlined_call_operand.vmem [shape: s32[16,1], index: 0, kind: input, shape index: {}]   ;;  %s175_s1 = inlined_call_operand.vmem [shape: f32[16,128], index: 1, kind: input, shape index: {}]   ;;  %s176_s2 = inlined_call_operand.vmem [shape: f32[16,128], index: 2, kind: output, shape index: {}]  }
   0x1   :  { %138 = vset.pattern.permute.xlu0 %v139_v0  ;;  %v11_v1 = vld [vmem:[%s174_s0] sm:$0xff]  ;;  %v28_v3 = vld [vmem:[%s175_s1 + $0x8] sm:$0xff] }
   0x2   :  { %v27_v2 = vld [vmem:[%s175_s1] sm:$0xff]  ;;  %16 = vperm.xlu0 %138, %v11_v1   ;;  %v12_v4 = vld [vmem:[%s174_s0 + $0x8] sm:$0xff]  ;;  %v14_v7 = vand.u32 127, %v13_v6 }
   0x3   :  { %v132_v5 = vpack.c.bf16 %v28_v3, %v27_v2 }
   0x5   :  { %133 = vmatprep.subr.bf16.mxu0 %v132_v5 }
   0x6   :  { %19 = vperm.xlu0 %138, %v12_v4   ;;  %135 = vmatpush3.bf16.msra.mxu0 %v132_v5 }
  0x81   :  { %v17_v8 = vpop.permute.xlu0 %16 }
  0x82   :  { %vm21_vm1 = vcmp.eq.s32.totalorder %v14_v7, %v17_v8 }
  0x83   :  { %v117_v10 = vsel %vm21_vm1, 1.0, %v140_v9 }
  0x84   :  { %129 = vmatprep.mubr.msk.f32.mxu0 %vm29_vm0, %v117_v10 }
  0x85   :  { %v20_v11 = vpop.permute.xlu0 %19 }
  0x86   :  { %vm22_vm2 = vcmp.eq.s32.totalorder %v14_v7, %v20_v11 }
  0x87   :  { %v118_v12 = vsel %vm22_vm2, 1.0, %v140_v9 }
  0x88   :  { %130 = vmatmul.mubr.msk.f32.vlgmr.msra.gmra.mrb[0].mxu0 %vm29_vm0, %v118_v12 }
 0x15b   :  { %v131_v13 = vpop.f32.mrb[0].mxu0 }
 0x15c   :  { %112 = vst [vmem:[%s176_s2 + $0x8] sm:$0xff] %v131_v13  ;;  %v102_v14 = vpop.f32.mrb[1].mxu0 }
 0x15d   :  { %111 = vst [vmem:[%s176_s2] sm:$0xff] %v102_v14 }

</bundles_post_ra>
